<compile_context>
chip_gen: v7x
topology: tpu7x:2x2x1
jax: 0.10.0
libtpu: 0.0.40
codegen_flags: <defaults>
</compile_context>

<pallas_src>
import functools

import jax
import jax.numpy as jnp
from jax.experimental import pallas as pl
from jax.experimental.pallas import tpu as pltpu

BN_EPS = 1e-5


# ------------------------------ small helpers -------------------------------

def _round_up(a, b):
    return (a + b - 1) // b * b


def _sublane_pack(itemsize):
    # native sublane packing: f32 -> 8 rows, bf16 -> 16, int8/fp8 -> 32
    return max(8, 32 // int(itemsize))


def _vmem_capacity_bytes():
    try:
        cap = getattr(pltpu.get_tpu_info(), "vmem_capacity_bytes", None)
        if cap:
            return int(cap)
    except Exception:
        pass
    return 64 << 20  # conservative fallback (v7x-sized VMEM)


def _pick_tiles(nr, s, itemsize, pack, target_bytes):
    """(row_tile, lane_tile) for the (nr, s) view, honoring (8,128) rules."""
    row_tile = nr if nr <= pack else pack
    max_tl = max(128, (target_bytes // max(1, row_tile * itemsize)) // 128 * 128)
    if max_tl >= s:
        tl = s  # whole spatial extent in one (full-dim) lane block
        if nr > row_tile:
            budget_rows = target_bytes // max(1, tl * itemsize)
            if budget_rows >= nr:
                row_tile = nr
            elif budget_rows >= pack:
                row_tile = (budget_rows // pack) * pack
    else:
        tl = max_tl  # multiple of 128; ragged tail handled in-kernel
    return row_tile, tl


# ----------------------------- Pallas kernels --------------------------------

def _bn_stats_kernel(x_ref, sum_ref, sq_ref, *, s_total, lane_tile, mask_tail):
    """Per-row partial sum / sum-of-squares, accumulated in the output blocks."""
    l = pl.program_id(1)

    @pl.when(l == 0)
    def _init():
        sum_ref[...] = jnp.zeros_like(sum_ref)
        sq_ref[...] = jnp.zeros_like(sq_ref)

    x = x_ref[...].astype(jnp.float32)                     # (row_tile, lane_tile)
    if mask_tail:
        lane = jax.lax.broadcasted_iota(jnp.int32, x.shape, 1)
        x = jnp.where(lane < (s_total - l * lane_tile), x, 0.0)
    sum_ref[...] += jnp.sum(x, axis=-1, keepdims=True)
    sq_ref[...] += jnp.sum(x * x, axis=-1, keepdims=True)


def _bn_apply_kernel(x_ref, scale_ref, shift_ref, o_ref):
    """y = x * scale + shift (per-row folded scale/shift), lane-dense stream."""
    x = x_ref[...].astype(jnp.float32)
    o_ref[...] = (x * scale_ref[...] + shift_ref[...]).astype(o_ref.dtype)


def _bn_fused_kernel(x_ref, g_ref, b_ref, o_ref, *, inv_count, eps):
    """Single-pass BN when the whole (N, C, S) tensor is VMEM-resident."""
    n_lead = x_ref.shape[0]
    x0 = x_ref[0].astype(jnp.float32)                      # (C, S)
    s = x0
    q = x0 * x0
    for n in range(1, n_lead):
        xn = x_ref[n].astype(jnp.float32)
        s = s + xn
        q = q + xn * xn
    s = jnp.sum(s, axis=-1, keepdims=True)                 # (C, 1)
    q = jnp.sum(q, axis=-1, keepdims=True)
    mean = s * inv_count
    var = jnp.maximum(q * inv_count - mean * mean, 0.0)
    scale = jax.lax.rsqrt(var + eps) * g_ref[...]          # (C, 1)
    shift = b_ref[...] - mean * scale                      # (C, 1)
    for n in range(n_lead):
        xn = x_ref[n].astype(jnp.float32)
        o_ref[n] = (xn * scale + shift).astype(o_ref.dtype)


# ------------------------------ host wrapper ---------------------------------

@functools.partial(jax.jit,
                   static_argnames=("eps", "force_path", "target_block_bytes"))
def _bn3d(x, gamma, beta, eps, force_path, target_block_bytes):
    N, C, D, H, W = x.shape
    S = D * H * W
    NR = N * C
    itemsize = jnp.dtype(x.dtype).itemsize
    pack = _sublane_pack(itemsize)
    cap = _vmem_capacity_bytes()

    gamma_f = gamma.astype(jnp.float32)
    beta_f = beta.astype(jnp.float32)
    inv_count = 1.0 / float(N * S)

    if target_block_bytes is None:
        # ~4 MiB blocks on 128 MiB-VMEM parts (v5e/v6e), ~2 MiB on v7x (64 MiB)
        target_block_bytes = (4 << 20) if cap >= (96 << 20) else (2 << 20)

    # ---- fused single-kernel fast path (1 HBM read + 1 write of x) ----------
    fast_limit = min(int(cap * 0.6), 80 << 20)
    padded_elems = N * _round_up(C, pack) * _round_up(S, 128)
    fast_foot = padded_elems * (2 * itemsize + 4) + (2 << 20)
    use_fast = (fast_foot <= int(fast_limit * 0.9)) and N <= 64
    if force_path == "fast":
        use_fast = True
    elif force_path == "tiled":
        use_fast = False

    if use_fast:
        x3 = x.reshape(N, C, S)
        out3 = pl.pallas_call(
            functools.partial(_bn_fused_kernel,
                              inv_count=inv_count, eps=float(eps)),
            out_shape=jax.ShapeDtypeStruct((N, C, S), x.dtype),
            compiler_params=pltpu.CompilerParams(
                vmem_limit_bytes=int(fast_limit)),
        )(x3, gamma_f.reshape(C, 1), beta_f.reshape(C, 1))
        return out3.reshape(N, C, D, H, W)

    # ---- tiled two-pass path -------------------------------------------------
    x2 = x.reshape(NR, S)                                   # free view
    row_tile, tl = _pick_tiles(NR, S, itemsize, pack, target_block_bytes)
    grid = (pl.cdiv(NR, row_tile), pl.cdiv(S, tl))

    block_bytes = row_tile * tl * itemsize
    block_f32 = row_tile * tl * 4
    vmem_limit = 4 * block_bytes + 4 * block_f32 + (8 << 20)
    vmem_limit = min(max(vmem_limit, 32 << 20), int(cap * 0.7))

    x_spec = pl.BlockSpec((row_tile, tl), lambda r, l: (r, l))
    rowvec_spec = pl.BlockSpec((row_tile, 1), lambda r, l: (r, 0))

    # pass 1: per-row partial sums (row axis "parallel" -> v7x megacore-safe)
    sums, sqs = pl.pallas_call(
        functools.partial(_bn_stats_kernel, s_total=S, lane_tile=tl,
                          mask_tail=(S % tl != 0)),
        out_shape=(jax.ShapeDtypeStruct((NR, 1), jnp.float32),
                   jax.ShapeDtypeStruct((NR, 1), jnp.float32)),
        grid=grid,
        in_specs=[x_spec],
        out_specs=(rowvec_spec, rowvec_spec),
        compiler_params=pltpu.CompilerParams(
            dimension_semantics=("parallel", "arbitrary"),
            vmem_limit_bytes=int(vmem_limit)),
    )(x2)

    # Tiny per-channel combine + gamma/beta folding (plain jnp between passes).
    # Per-row partials combined here (not one serial accumulator) keep the
    # E[x^2]-E[x]^2 cancellation error small.
    mean_c = jnp.sum(sums.reshape(N, C), axis=0) * inv_count          # (C,)
    ex2_c = jnp.sum(sqs.reshape(N, C), axis=0) * inv_count
    var_c = jnp.maximum(ex2_c - mean_c * mean_c, 0.0)
    scale_c = jax.lax.rsqrt(var_c + float(eps)) * gamma_f
    shift_c = beta_f - mean_c * scale_c
    scale_r = jnp.broadcast_to(scale_c[None, :], (N, C)).reshape(NR, 1)
    shift_r = jnp.broadcast_to(shift_c[None, :], (N, C)).reshape(NR, 1)

    # pass 2: y = x*scale + shift (pure streaming; both axes "parallel")
    out2 = pl.pallas_call(
        _bn_apply_kernel,
        out_shape=jax.ShapeDtypeStruct((NR, S), x.dtype),
        grid=grid,
        in_specs=[x_spec, rowvec_spec, rowvec_spec],
        out_specs=x_spec,
        compiler_params=pltpu.CompilerParams(
            dimension_semantics=("parallel", "parallel"),
            vmem_limit_bytes=int(vmem_limit)),
    )(x2, scale_r, shift_r)
    return out2.reshape(N, C, D, H, W)


def my_batchnorm3d(x, gamma, beta, eps=BN_EPS, *, force_path=None,
                   target_block_bytes=None):
    """Training-mode BatchNorm over (N, D, H, W) per channel on NCDHW input."""
    return _bn3d(x, gamma, beta, eps, force_path, target_block_bytes)


# ------------------------------ pure-JAX reference ---------------------------

def _reference(x, gamma, beta, eps=BN_EPS):
    mean = jnp.mean(x, axis=(0, 2, 3, 4), keepdims=True)
    var = jnp.mean((x - mean) ** 2, axis=(0, 2, 3, 4), keepdims=True)
    g = gamma.reshape(1, -1, 1, 1, 1)
    b = beta.reshape(1, -1, 1, 1, 1)
    return (x - mean) * jax.lax.rsqrt(var + eps) * g + b


# ---------------------------------- main --------------------------------------

if __name__ == "__main__":
    key = jax.random.PRNGKey(0)
    kx, kg, kb, kx2 = jax.random.split(key, 4)

    def check(x, gamma, beta, **kw):
        out = jax.block_until_ready(my_batchnorm3d(x, gamma, beta, **kw))
        assert out.shape == x.shape, out.shape
        assert bool(jnp.all(jnp.isfinite(out)))
        ref = _reference(x, gamma, beta)
        err = float(jnp.max(jnp.abs(out - ref)))
        assert bool(jnp.allclose(out, ref, atol=1e-3, rtol=1e-3)), err

    C = 4
    gamma = 1.0 + 0.1 * jax.random.normal(kg, (C,), jnp.float32)
    beta = 0.1 * jax.random.normal(kb, (C,), jnp.float32)

    # Case 1: fused single-kernel fast path (auto-selected at this size).
    x1 = 0.5 + 2.0 * jax.random.normal(kx, (2, C, 4, 6, 6), jnp.float32)
    check(x1, gamma, beta)

    # Case 2: tiled two-pass path with ragged lane tail (S=144, not /128) and
    # ragged row block (N*C=12, not /8); tiny forced block exercises the
    # in-kernel masking and boundary-block clipping paths.
    x2 = -1.0 + jax.random.normal(kx2, (3, C, 3, 6, 8), jnp.float32)
    check(x2, gamma, beta, force_path="tiled", target_block_bytes=4096)

    # Case 3: tiled path with default (generation-aware) block sizing.
    check(x1, gamma, beta, force_path="tiled")

    print("KERNEL_OK")
</pallas_src>

<mosaic_0001>
module attributes {stable_mosaic.version = 11 : i64} {
  func.func @_bn_fused_kernel(%arg0: memref<2x4x144xf32, #tpu.memory_space<vmem>>, %arg1: memref<4x1xf32, #tpu.memory_space<vmem>>, %arg2: memref<4x1xf32, #tpu.memory_space<vmem>>, %arg3: memref<2x4x144xf32, #tpu.memory_space<vmem>>) attributes {dimension_semantics = [], scalar_prefetch = 0 : i64, scratch_operands = 0 : i64, tpu.core_type = #tpu.core_type<tc>} {
    %c0 = arith.constant 0 : index
    %c0_0 = arith.constant 0 : index
    %c0_1 = arith.constant 0 : index
    %0 = vector.load %arg0[%c0, %c0_0, %c0_1] : memref<2x4x144xf32, #tpu.memory_space<vmem>>, vector<1x4x144xf32>
    %1 = vector.shape_cast %0 : vector<1x4x144xf32> to vector<4x144xf32>
    %2 = arith.mulf %1, %1 : vector<4x144xf32>
    %c1 = arith.constant 1 : index
    %c0_2 = arith.constant 0 : index
    %c0_3 = arith.constant 0 : index
    %3 = vector.load %arg0[%c1, %c0_2, %c0_3] : memref<2x4x144xf32, #tpu.memory_space<vmem>>, vector<1x4x144xf32>
    %4 = vector.shape_cast %3 : vector<1x4x144xf32> to vector<4x144xf32>
    %5 = arith.addf %1, %4 : vector<4x144xf32>
    %6 = arith.mulf %4, %4 : vector<4x144xf32>
    %7 = arith.addf %2, %6 : vector<4x144xf32>
    %cst = arith.constant dense<0.000000e+00> : vector<4xf32>
    %8 = vector.multi_reduction <add>, %5, %cst [1] : vector<4x144xf32> to vector<4xf32>
    %9 = vector.shape_cast %8 : vector<4xf32> to vector<4x1xf32>
    %cst_4 = arith.constant dense<0.000000e+00> : vector<4xf32>
    %10 = vector.multi_reduction <add>, %7, %cst_4 [1] : vector<4x144xf32> to vector<4xf32>
    %11 = vector.shape_cast %10 : vector<4xf32> to vector<4x1xf32>
    %cst_5 = arith.constant 0.00347222225 : f32
    %12 = vector.broadcast %cst_5 : f32 to vector<4x1xf32>
    %13 = arith.mulf %9, %12 : vector<4x1xf32>
    %cst_6 = arith.constant 0.00347222225 : f32
    %14 = vector.broadcast %cst_6 : f32 to vector<4x1xf32>
    %15 = arith.mulf %11, %14 : vector<4x1xf32>
    %16 = arith.mulf %13, %13 : vector<4x1xf32>
    %17 = arith.subf %15, %16 : vector<4x1xf32>
    %cst_7 = arith.constant 0.000000e+00 : f32
    %18 = vector.broadcast %cst_7 : f32 to vector<4x1xf32>
    %19 = arith.maximumf %17, %18 : vector<4x1xf32>
    %cst_8 = arith.constant 9.99999974E-6 : f32
    %20 = vector.broadcast %cst_8 : f32 to vector<4x1xf32>
    %21 = arith.addf %19, %20 : vector<4x1xf32>
    %22 = math.rsqrt %21 : vector<4x1xf32>
    %c0_9 = arith.constant 0 : index
    %c0_10 = arith.constant 0 : index
    %23 = vector.load %arg1[%c0_9, %c0_10] : memref<4x1xf32, #tpu.memory_space<vmem>>, vector<4x1xf32>
    %24 = arith.mulf %22, %23 : vector<4x1xf32>
    %c0_11 = arith.constant 0 : index
    %c0_12 = arith.constant 0 : index
    %25 = vector.load %arg2[%c0_11, %c0_12] : memref<4x1xf32, #tpu.memory_space<vmem>>, vector<4x1xf32>
    %26 = arith.mulf %13, %24 : vector<4x1xf32>
    %27 = arith.subf %25, %26 : vector<4x1xf32>
    %c0_13 = arith.constant 0 : index
    %c0_14 = arith.constant 0 : index
    %c0_15 = arith.constant 0 : index
    %28 = vector.load %arg0[%c0_13, %c0_14, %c0_15] : memref<2x4x144xf32, #tpu.memory_space<vmem>>, vector<1x4x144xf32>
    %29 = vector.shape_cast %28 : vector<1x4x144xf32> to vector<4x144xf32>
    %30 = vector.broadcast %24 : vector<4x1xf32> to vector<4x144xf32>
    %31 = arith.mulf %29, %30 : vector<4x144xf32>
    %32 = vector.broadcast %27 : vector<4x1xf32> to vector<4x144xf32>
    %33 = arith.addf %31, %32 : vector<4x144xf32>
    %c0_16 = arith.constant 0 : index
    %c0_17 = arith.constant 0 : index
    %c0_18 = arith.constant 0 : index
    %34 = vector.load %arg3[%c0_16, %c0_17, %c0_18] : memref<2x4x144xf32, #tpu.memory_space<vmem>>, vector<1x4x144xf32>
    %35 = vector.shape_cast %34 : vector<1x4x144xf32> to vector<4x144xf32>
    %36 = vector.shape_cast %33 : vector<4x144xf32> to vector<1x4x144xf32>
    tpu.vector_store %arg3[%c0_16, %c0_17, %c0_18], %36 {strides = array<i32>} : memref<2x4x144xf32, #tpu.memory_space<vmem>>, vector<1x4x144xf32>,
    %c1_19 = arith.constant 1 : index
    %c0_20 = arith.constant 0 : index
    %c0_21 = arith.constant 0 : index
    %37 = vector.load %arg0[%c1_19, %c0_20, %c0_21] : memref<2x4x144xf32, #tpu.memory_space<vmem>>, vector<1x4x144xf32>
    %38 = vector.shape_cast %37 : vector<1x4x144xf32> to vector<4x144xf32>
    %39 = vector.broadcast %24 : vector<4x1xf32> to vector<4x144xf32>
    %40 = arith.mulf %38, %39 : vector<4x144xf32>
    %41 = vector.broadcast %27 : vector<4x1xf32> to vector<4x144xf32>
    %42 = arith.addf %40, %41 : vector<4x144xf32>
    %c1_22 = arith.constant 1 : index
    %c0_23 = arith.constant 0 : index
    %c0_24 = arith.constant 0 : index
    %43 = vector.load %arg3[%c1_22, %c0_23, %c0_24] : memref<2x4x144xf32, #tpu.memory_space<vmem>>, vector<1x4x144xf32>
    %44 = vector.shape_cast %43 : vector<1x4x144xf32> to vector<4x144xf32>
    %45 = vector.shape_cast %42 : vector<4x144xf32> to vector<1x4x144xf32>
    tpu.vector_store %arg3[%c1_22, %c0_23, %c0_24], %45 {strides = array<i32>} : memref<2x4x144xf32, #tpu.memory_space<vmem>>, vector<1x4x144xf32>,
    return
  }
}

</mosaic_0001>

<bundles_post_ra>
// kernel: _bn3d.1
= control target key start
LH: loop header
LB: loop body
LE: loop exit
PB: predicated region body
PF: predicated region fallthrough
CT: control target
= control target key end

     0   :  { %vm24_vm0 = vcmask 1043456   ;;  %vm26_vm1 = vcmask 125952   ;;  %v98_v14 = vmov 0   ;;  %v99_v29 = vmov 839922192   ;;  %s141_s0 = inlined_call_operand.vmem [shape: f32[2,4,144], index: 0, kind: input, shape index: {}]   ;;  %s142_s1 = inlined_call_operand.vmem [shape: f32[4,1], index: 1, kind: input, shape index: {}]   ;;  %s143_s2 = inlined_call_operand.vmem [shape: f32[4,1], index: 2, kind: input, shape index: {}]   ;;  %s144_s3 = inlined_call_operand.vmem [shape: f32[2,4,144], index: 3, kind: output, shape index: {}]  }
   0x1   :  { %v14_v0 = vld [vmem:[%s141_s0] sm:$0xff]  ;;  %v89_v1 = vld [vmem:[%s141_s0 + $0x8] sm:$0xff]  ;;  %94 = vset.pattern.permute.xlu1 %v98_v14  ;;  %95 = vset.pattern.permute.xlu0 %v98_v14  ;;  %v56_v30 = vunpack.c.l.s4 %v99_v29  ;;  %v58_v31 = vlaneseq  ;;  %vm77_vm2 = vcmask 130052  }
   0x2   :  { %v18_v2 = vadd.f32 %v89_v1, %v14_v0  ;;  %v19_v3 = vmul.f32 %v89_v1, %v89_v1  ;;  %v15_v4 = vmul.f32 %v14_v0, %v14_v0  ;;  %v46_v23 = vld [vmem:[%s142_s1] sm:$0xf]  ;;  %vm78_vm3 = vmor %vm77_vm2, %vm24_vm0 }
   0x3   :  { %v48_v26 = vld [vmem:[%s143_s2] sm:$0xf]  ;;  %v57_v32 = vunpack.c.0.s8 %v56_v30  ;;  %v59_v33 = vshrl.u32 %v58_v31, 7 }
   0x4   :  { %v22_v5 = vcombine.high %v18_v2, %v18_v2  ;;  %v25_v6 = vsel %vm24_vm0, %v18_v2, 0.0  ;;  %v20_v7 = vadd.f32 %v19_v3, %v15_v4 }
   0x5   :  { %v60_v34 = vsub.s32 %v57_v32, %v59_v33 }
   0x6   :  { %v27_v8 = vsel %vm26_vm1, %v22_v5, 0.0  ;;  %v32_v9 = vcombine.high %v20_v7, %v20_v7  ;;  %v34_v10 = vsel %vm24_vm0, %v20_v7, 0.0 }
   0x7   :  { %v28_v11 = vadd.f32 %v27_v8, %v25_v6 }
   0x8   :  { %v35_v12 = vsel %vm26_vm1, %v32_v9, 0.0 }
   0x9   :  { %29 = vadd.xlane.f32.xlu0 %v28_v11  ;;  %v36_v13 = vadd.f32 %v35_v12, %v34_v10 }
   0xd   :  { %37 = vadd.xlane.f32.xlu0 %v36_v13 }
  0x96   :  { %v30_v15 = vpop.xlane.xlu0 %29 }
  0x97   :  { %v39_v16 = vmul.f32 0.0034722222, %v30_v15 }
  0x99   :  { %v41_v18 = vmul.f32 %v39_v16, %v39_v16 }
  0x9a   :  { %v38_v17 = vpop.xlane.xlu0 %37 }
  0x9b   :  { %v40_v19 = vmul.f32 0.0034722222, %v38_v17 }
  0x9d   :  { %v42_v20 = vsub.f32 %v40_v19, %v41_v18 }
  0x9f   :  { %v43_v21 = vmax.f32 %v42_v20, 0.0 }
  0xa1   :  { %v44_v22 = vadd.f32 1e-05, %v43_v21 }
  0xa3   :  { %96 = vrsqrt.f32 %v44_v22 }
  0xad   :  { %v97_v24 = vpop.eup %96 }
  0xae   :  { %v47_v25 = vmul.f32 %v97_v24, %v46_v23 }
  0xb0   :  { %53 = vperm.xlu1 %94, %v47_v25   ;;  %v49_v27 = vmul.f32 %v47_v25, %v39_v16 }
  0xb2   :  { %v50_v28 = vsub.f32 %v48_v26, %v49_v27 }
  0xb4   :  { %66 = vperm.xlu1 %94, %v50_v28  }
 0x12f   :  { %v54_v35 = vpop.permute.xlu1 %53 }
 0x130   :  { %v61_v36 = vrot.slane %v54_v35, %v60_v34 }
 0x132   :  { %v63_v38 = vmul.f32 %v61_v36, %v14_v0  ;;  %v81_v39 = vmul.f32 %v89_v1, %v61_v36 }
 0x133   :  { %v67_v37 = vpop.permute.xlu1 %66 }
 0x134   :  { %v74_v40 = vrot.slane %v67_v37, %v60_v34 }
 0x136   :  { %v76_v41 = vadd.f32 %v74_v40, %v63_v38  ;;  %v82_v42 = vadd.f32 %v81_v39, %v74_v40 }
 0x138   :  { %79 = vst.msk [vmem:[%s144_s3] sm:$0xff] %vm78_vm3, %v76_v41  ;;  %91 = vst.msk [vmem:[%s144_s3 + $0x8] sm:$0xff] %vm78_vm3, %v82_v42 }

</bundles_post_ra>
